<compile_context>
chip_gen: v7x
topology: tpu7x:2x2x1
jax: 0.10.0
libtpu: 0.0.40
codegen_flags: <defaults>
</compile_context>

<pallas_src>
import functools
import math

import jax
import jax.numpy as jnp
import numpy as np
from jax.experimental import pallas as pl
from jax.experimental.pallas import tpu as pltpu

_HALF_LOG_2PI = 0.5 * math.log(2.0 * math.pi)


def _sum_all_2d(x):
    # Full reduction of a 2-D tile, kept as shape (1, 1) so stores stay 2-D.
    return jnp.sum(jnp.sum(x, axis=1, keepdims=True), axis=0, keepdims=True)


def _pick_tile(dim, target):
    """Largest tile <= target that divides `dim` and is a multiple of 128.

    Falls back to the full dim (always a legal block: block == array extent).
    """
    if dim <= target:
        return dim
    t = (target // 128) * 128
    while t >= 128:
        if dim % t == 0:
            return t
        t -= 128
    return dim


def _bayesian_linear_kernel(x_ref, wmu_ref, wrho_ref, weps_ref,
                            bmu_ref, brho_ref, beps_ref,
                            y_ref, lp_ref, lq_ref,
                            y_acc, lp_acc, lq_acc,
                            *, prior_coeff):
    k = pl.program_id(1)
    nk = pl.num_programs(1)

    @pl.when(k == 0)
    def _init():
        y_acc[...] = jnp.zeros_like(y_acc)
        lp_acc[...] = jnp.zeros_like(lp_acc)
        lq_acc[...] = jnp.zeros_like(lq_acc)

    # Sampled weight tile in contraction-major layout (tile_k, tile_n).
    wmu = wmu_ref[...]
    wrho = wrho_ref[...]
    weps = weps_ref[...]
    # Naive softplus matches the torch expression torch.log(1 + torch.exp(rho)).
    # TODO(synk): switch to a log1p/max-trick softplus if bit-matching torch is not required.
    w_sigma = jnp.log(1.0 + jnp.exp(wrho))
    w = wmu + w_sigma * weps

    # Prior partial:  -0.5/sigma_p^2 * sum(w^2)         (constants folded in wrapper)
    lp_acc[...] += prior_coeff * _sum_all_2d(w * w)
    # Posterior partial via (w - mu)/sigma == eps:  -0.5*sum(eps^2) - sum(log sigma)
    lq_acc[...] += (-0.5) * _sum_all_2d(weps * weps) - _sum_all_2d(jnp.log(w_sigma))

    # MXU: (B, tile_k) x (tile_k, tile_n) -> f32 accumulator, no in-kernel transpose.
    y_acc[...] += jnp.dot(x_ref[...], w, preferred_element_type=jnp.float32)

    @pl.when(k == nk - 1)
    def _finalize():
        # Bias terms are counted exactly once per N tile (only at the last K step).
        bmu = bmu_ref[...]
        brho = brho_ref[...]
        beps = beps_ref[...]
        b_sigma = jnp.log(1.0 + jnp.exp(brho))
        b = bmu + b_sigma * beps

        lp = lp_acc[...] + prior_coeff * _sum_all_2d(b * b)
        lq = (lq_acc[...] + (-0.5) * _sum_all_2d(beps * beps)
              - _sum_all_2d(jnp.log(b_sigma)))

        y_ref[...] = (y_acc[...] + b).astype(y_ref.dtype)

        # Lane-dense (1, 128) partial outputs: value in lane 0, zeros elsewhere.
        lane = jax.lax.broadcasted_iota(jnp.int32, lp_ref.shape, 1)
        lp_ref[...] = jnp.where(lane == 0, lp, 0.0)
        lq_ref[...] = jnp.where(lane == 0, lq, 0.0)


def bayesian_linear_forward(x, w_mu, w_rho, w_eps, b_mu, b_rho, b_eps,
                            prior_sigma=1.0, tile_n_target=512, tile_k_target=512):
    B, f_in = x.shape
    f_out = w_mu.shape[0]

    # One XLA transpose outside the kernel: weights become (F_in, F_out).
    wmu_t = jnp.transpose(w_mu)
    wrho_t = jnp.transpose(w_rho)
    weps_t = jnp.transpose(w_eps)

    bmu2 = b_mu.reshape(1, f_out)
    brho2 = b_rho.reshape(1, f_out)
    beps2 = b_eps.reshape(1, f_out)

    tile_n = _pick_tile(f_out, tile_n_target)
    tile_k = _pick_tile(f_in, tile_k_target)
    n_tiles = f_out // tile_n
    k_tiles = f_in // tile_k
    grid = (n_tiles, k_tiles)

    prior_coeff = -0.5 / float(prior_sigma) ** 2

    kernel = functools.partial(_bayesian_linear_kernel, prior_coeff=prior_coeff)

    x_spec = pl.BlockSpec((B, tile_k), lambda n, k: (0, k))
    w_spec = pl.BlockSpec((tile_k, tile_n), lambda n, k: (k, n))
    bias_spec = pl.BlockSpec((1, tile_n), lambda n, k: (0, n))
    y_spec = pl.BlockSpec((B, tile_n), lambda n, k: (0, n))
    part_spec = pl.BlockSpec((1, 128), lambda n, k: (0, n))

    # Advisory cost estimate so XLA schedules the eps generation around the kernel.
    flops = 2 * B * f_in * f_out + 8 * f_in * f_out
    transcendentals = 3 * (f_in * f_out + f_out)      # exp + 2x log per sampled element
    bytes_accessed = 4 * (3 * f_in * f_out + 3 * f_out + B * f_in + B * f_out
                          + 2 * n_tiles * 128)

    y, lp_parts, lq_parts = pl.pallas_call(
        kernel,
        grid_spec=pltpu.PrefetchScalarGridSpec(
            num_scalar_prefetch=0,
            grid=grid,
            in_specs=[x_spec, w_spec, w_spec, w_spec,
                      bias_spec, bias_spec, bias_spec],
            out_specs=[y_spec, part_spec, part_spec],
            scratch_shapes=[pltpu.VMEM((B, tile_n), jnp.float32),
                            pltpu.VMEM((1, 1), jnp.float32),
                            pltpu.VMEM((1, 1), jnp.float32)],
        ),
        out_shape=[
            jax.ShapeDtypeStruct((B, f_out), x.dtype),
            jax.ShapeDtypeStruct((1, n_tiles * 128), jnp.float32),
            jax.ShapeDtypeStruct((1, n_tiles * 128), jnp.float32),
        ],
        compiler_params=pltpu.CompilerParams(
            dimension_semantics=("parallel", "arbitrary"),
            # Tile budget (~6 MiB of double-buffered weight streams at 512x512)
            # fits the v7x 32 MiB scoped VMEM as well as v5e/v6e.
            vmem_limit_bytes=32 * 1024 * 1024,
        ),
        cost_estimate=pl.CostEstimate(flops=flops,
                                      transcendentals=transcendentals,
                                      bytes_accessed=bytes_accessed),
    )(x, wmu_t, wrho_t, weps_t, bmu2, brho2, beps2)

    # Constant log-prob tails, added once instead of per element inside the kernel.
    n_elems = f_out * f_in + f_out
    log_prior = jnp.sum(lp_parts) + n_elems * (-math.log(float(prior_sigma)) - _HALF_LOG_2PI)
    log_post = jnp.sum(lq_parts) + n_elems * (-_HALF_LOG_2PI)
    return y, log_prior, log_post


if __name__ == "__main__":
    B, F_IN, F_OUT = 8, 32, 64
    PRIOR_SIGMA = 1.0  # torch.distributions.Normal(0, prior_var) uses this as scale

    key = jax.random.PRNGKey(0)
    k_x, k_wmu, k_wrho, k_bmu, k_brho, k_weps, k_beps = jax.random.split(key, 7)

    x = jax.random.normal(k_x, (B, F_IN), dtype=jnp.float32)

    # The torch module initialises parameters to zero; small random values are used
    # here so the correctness check exercises every term of the kernel.
    w_mu = 0.3 * jax.random.normal(k_wmu, (F_OUT, F_IN), dtype=jnp.float32)
    w_rho = 0.5 * jax.random.normal(k_wrho, (F_OUT, F_IN), dtype=jnp.float32)
    b_mu = 0.3 * jax.random.normal(k_bmu, (F_OUT,), dtype=jnp.float32)
    b_rho = 0.5 * jax.random.normal(k_brho, (F_OUT,), dtype=jnp.float32)

    # Normal(0, 0.1) reparameterisation noise, deterministic via PRNGKey(0).
    w_eps = 0.1 * jax.random.normal(k_weps, (F_OUT, F_IN), dtype=jnp.float32)
    b_eps = 0.1 * jax.random.normal(k_beps, (F_OUT,), dtype=jnp.float32)

    y, log_prior, log_post = bayesian_linear_forward(
        x, w_mu, w_rho, w_eps, b_mu, b_rho, b_eps, prior_sigma=PRIOR_SIGMA)
    jax.block_until_ready((y, log_prior, log_post))

    # Plain-JAX reference for correctness checking.
    w_sigma = jnp.log(1.0 + jnp.exp(w_rho))
    b_sigma = jnp.log(1.0 + jnp.exp(b_rho))
    w = w_mu + w_sigma * w_eps
    b = b_mu + b_sigma * b_eps
    y_ref = jnp.dot(x, w.T, precision=jax.lax.Precision.HIGHEST) + b

    def logp(v, mu, sigma):
        return -0.5 * ((v - mu) / sigma) ** 2 - jnp.log(sigma) - _HALF_LOG_2PI

    lp_ref = jnp.sum(logp(w, 0.0, PRIOR_SIGMA)) + jnp.sum(logp(b, 0.0, PRIOR_SIGMA))
    lq_ref = jnp.sum(logp(w, w_mu, w_sigma)) + jnp.sum(logp(b, b_mu, b_sigma))

    np.testing.assert_allclose(np.asarray(y), np.asarray(y_ref), rtol=1e-4, atol=1e-4)
    np.testing.assert_allclose(float(log_prior), float(lp_ref), rtol=1e-4, atol=1e-3)
    np.testing.assert_allclose(float(log_post), float(lq_ref), rtol=1e-4, atol=1e-3)

    print("KERNEL_OK")
</pallas_src>

<mosaic_0001>
module attributes {stable_mosaic.version = 11 : i64} {
  func.func @_bayesian_linear_kernel(%arg0: i32, %arg1: i32, %arg2: memref<8x32xf32, #tpu.memory_space<vmem>>, %arg3: memref<32x64xf32, #tpu.memory_space<vmem>>, %arg4: memref<32x64xf32, #tpu.memory_space<vmem>>, %arg5: memref<32x64xf32, #tpu.memory_space<vmem>>, %arg6: memref<1x64xf32, #tpu.memory_space<vmem>>, %arg7: memref<1x64xf32, #tpu.memory_space<vmem>>, %arg8: memref<1x64xf32, #tpu.memory_space<vmem>>, %arg9: memref<8x64xf32, #tpu.memory_space<vmem>>, %arg10: memref<1x128xf32, #tpu.memory_space<vmem>>, %arg11: memref<1x128xf32, #tpu.memory_space<vmem>>, %arg12: memref<8x64xf32, #tpu.memory_space<vmem>>, %arg13: memref<1x1xf32, #tpu.memory_space<vmem>>, %arg14: memref<1x1xf32, #tpu.memory_space<vmem>>) attributes {dimension_semantics = [#tpu.dimension_semantics<parallel>, #tpu.dimension_semantics<arbitrary>], iteration_bounds = array<i64: 1, 1>, scalar_prefetch = 0 : i64, scratch_operands = 3 : i64, tpu.core_type = #tpu.core_type<tc>, window_params = [{transform_indices = @transform_0, window_bounds = array<i64: 8, 32>}, {transform_indices = @transform_1, window_bounds = array<i64: 32, 64>}, {transform_indices = @transform_2, window_bounds = array<i64: 32, 64>}, {transform_indices = @transform_3, window_bounds = array<i64: 32, 64>}, {transform_indices = @transform_4, window_bounds = array<i64: 1, 64>}, {transform_indices = @transform_5, window_bounds = array<i64: 1, 64>}, {transform_indices = @transform_6, window_bounds = array<i64: 1, 64>}, {transform_indices = @transform_7, window_bounds = array<i64: 8, 64>}, {transform_indices = @transform_8, window_bounds = array<i64: 1, 128>}, {transform_indices = @transform_9, window_bounds = array<i64: 1, 128>}]} {
    %c0_i32 = arith.constant 0 : i32
    %0 = arith.cmpi eq, %arg1, %c0_i32 : i32
    %1 = arith.extui %0 : i1 to i32
    %c0_i32_0 = arith.constant 0 : i32
    %2 = arith.cmpi ne, %1, %c0_i32_0 : i32
    scf.if %2 {
      %cst_31 = arith.constant 0.000000e+00 : f32
      %46 = vector.broadcast %cst_31 : f32 to vector<8x64xf32>
      %c0_32 = arith.constant 0 : index
      %c0_33 = arith.constant 0 : index
      %47 = vector.load %arg12[%c0_32, %c0_33] : memref<8x64xf32, #tpu.memory_space<vmem>>, vector<8x64xf32>
      tpu.vector_store %arg12[%c0_32, %c0_33], %46 {strides = array<i32>} : memref<8x64xf32, #tpu.memory_space<vmem>>, vector<8x64xf32>,
      %cst_34 = arith.constant 0.000000e+00 : f32
      %48 = vector.broadcast %cst_34 : f32 to vector<1x1xf32>
      %c0_35 = arith.constant 0 : index
      %c0_36 = arith.constant 0 : index
      %49 = vector.load %arg13[%c0_35, %c0_36] : memref<1x1xf32, #tpu.memory_space<vmem>>, vector<1x1xf32>
      tpu.vector_store %arg13[%c0_35, %c0_36], %48 {strides = array<i32>} : memref<1x1xf32, #tpu.memory_space<vmem>>, vector<1x1xf32>,
      %cst_37 = arith.constant 0.000000e+00 : f32
      %50 = vector.broadcast %cst_37 : f32 to vector<1x1xf32>
      %c0_38 = arith.constant 0 : index
      %c0_39 = arith.constant 0 : index
      %51 = vector.load %arg14[%c0_38, %c0_39] : memref<1x1xf32, #tpu.memory_space<vmem>>, vector<1x1xf32>
      tpu.vector_store %arg14[%c0_38, %c0_39], %50 {strides = array<i32>} : memref<1x1xf32, #tpu.memory_space<vmem>>, vector<1x1xf32>,
    } else {
    }
    %c0 = arith.constant 0 : index
    %c0_1 = arith.constant 0 : index
    %3 = vector.load %arg3[%c0, %c0_1] : memref<32x64xf32, #tpu.memory_space<vmem>>, vector<32x64xf32>
    %c0_2 = arith.constant 0 : index
    %c0_3 = arith.constant 0 : index
    %4 = vector.load %arg4[%c0_2, %c0_3] : memref<32x64xf32, #tpu.memory_space<vmem>>, vector<32x64xf32>
    %c0_4 = arith.constant 0 : index
    %c0_5 = arith.constant 0 : index
    %5 = vector.load %arg5[%c0_4, %c0_5] : memref<32x64xf32, #tpu.memory_space<vmem>>, vector<32x64xf32>
    %6 = math.exp %4 : vector<32x64xf32>
    %cst = arith.constant 1.000000e+00 : f32
    %7 = vector.broadcast %cst : f32 to vector<32x64xf32>
    %8 = arith.addf %7, %6 : vector<32x64xf32>
    %9 = math.log %8 : vector<32x64xf32>
    %10 = arith.mulf %9, %5 : vector<32x64xf32>
    %11 = arith.addf %3, %10 : vector<32x64xf32>
    %c0_6 = arith.constant 0 : index
    %c0_7 = arith.constant 0 : index
    %12 = vector.load %arg13[%c0_6, %c0_7] : memref<1x1xf32, #tpu.memory_space<vmem>>, vector<1x1xf32>
    %13 = arith.mulf %11, %11 : vector<32x64xf32>
    %cst_8 = arith.constant dense<0.000000e+00> : vector<32xf32>
    %14 = vector.multi_reduction <add>, %13, %cst_8 [1] : vector<32x64xf32> to vector<32xf32>
    %15 = vector.shape_cast %14 : vector<32xf32> to vector<32x1xf32>
    %cst_9 = arith.constant dense<0.000000e+00> : vector<1xf32>
    %16 = vector.multi_reduction <add>, %15, %cst_9 [0] : vector<32x1xf32> to vector<1xf32>
    %17 = vector.shape_cast %16 : vector<1xf32> to vector<1x1xf32>
    %cst_10 = arith.constant -5.000000e-01 : f32
    %18 = vector.broadcast %cst_10 : f32 to vector<1x1xf32>
    %19 = arith.mulf %18, %17 : vector<1x1xf32>
    %20 = arith.addf %12, %19 : vector<1x1xf32>
    %c0_11 = arith.constant 0 : index
    %c0_12 = arith.constant 0 : index
    %21 = vector.load %arg13[%c0_11, %c0_12] : memref<1x1xf32, #tpu.memory_space<vmem>>, vector<1x1xf32>
    tpu.vector_store %arg13[%c0_11, %c0_12], %20 {strides = array<i32>} : memref<1x1xf32, #tpu.memory_space<vmem>>, vector<1x1xf32>,
    %c0_13 = arith.constant 0 : index
    %c0_14 = arith.constant 0 : index
    %22 = vector.load %arg14[%c0_13, %c0_14] : memref<1x1xf32, #tpu.memory_space<vmem>>, vector<1x1xf32>
    %23 = arith.mulf %5, %5 : vector<32x64xf32>
    %cst_15 = arith.constant dense<0.000000e+00> : vector<32xf32>
    %24 = vector.multi_reduction <add>, %23, %cst_15 [1] : vector<32x64xf32> to vector<32xf32>
    %25 = vector.shape_cast %24 : vector<32xf32> to vector<32x1xf32>
    %cst_16 = arith.constant dense<0.000000e+00> : vector<1xf32>
    %26 = vector.multi_reduction <add>, %25, %cst_16 [0] : vector<32x1xf32> to vector<1xf32>
    %27 = vector.shape_cast %26 : vector<1xf32> to vector<1x1xf32>
    %cst_17 = arith.constant -5.000000e-01 : f32
    %28 = vector.broadcast %cst_17 : f32 to vector<1x1xf32>
    %29 = arith.mulf %28, %27 : vector<1x1xf32>
    %30 = math.log %9 : vector<32x64xf32>
    %cst_18 = arith.constant dense<0.000000e+00> : vector<32xf32>
    %31 = vector.multi_reduction <add>, %30, %cst_18 [1] : vector<32x64xf32> to vector<32xf32>
    %32 = vector.shape_cast %31 : vector<32xf32> to vector<32x1xf32>
    %cst_19 = arith.constant dense<0.000000e+00> : vector<1xf32>
    %33 = vector.multi_reduction <add>, %32, %cst_19 [0] : vector<32x1xf32> to vector<1xf32>
    %34 = vector.shape_cast %33 : vector<1xf32> to vector<1x1xf32>
    %35 = arith.subf %29, %34 : vector<1x1xf32>
    %36 = arith.addf %22, %35 : vector<1x1xf32>
    %c0_20 = arith.constant 0 : index
    %c0_21 = arith.constant 0 : index
    %37 = vector.load %arg14[%c0_20, %c0_21] : memref<1x1xf32, #tpu.memory_space<vmem>>, vector<1x1xf32>
    tpu.vector_store %arg14[%c0_20, %c0_21], %36 {strides = array<i32>} : memref<1x1xf32, #tpu.memory_space<vmem>>, vector<1x1xf32>,
    %c0_22 = arith.constant 0 : index
    %c0_23 = arith.constant 0 : index
    %38 = vector.load %arg12[%c0_22, %c0_23] : memref<8x64xf32, #tpu.memory_space<vmem>>, vector<8x64xf32>
    %c0_24 = arith.constant 0 : index
    %c0_25 = arith.constant 0 : index
    %39 = vector.load %arg2[%c0_24, %c0_25] : memref<8x32xf32, #tpu.memory_space<vmem>>, vector<8x32xf32>
    %cst_26 = arith.constant dense<0.000000e+00> : vector<8x64xf32>
    %40 = tpu.matmul %39, %11, %cst_26 {dimension_numbers = #tpu.dot_dimension_numbers<[1], [0], [0], [1], [0, 0, 1, 1], [], []>} : vector<8x32xf32>, vector<32x64xf32>, vector<8x64xf32> -> vector<8x64xf32>
    %41 = arith.addf %38, %40 : vector<8x64xf32>
    %c0_27 = arith.constant 0 : index
    %c0_28 = arith.constant 0 : index
    %42 = vector.load %arg12[%c0_27, %c0_28] : memref<8x64xf32, #tpu.memory_space<vmem>>, vector<8x64xf32>
    tpu.vector_store %arg12[%c0_27, %c0_28], %41 {strides = array<i32>} : memref<8x64xf32, #tpu.memory_space<vmem>>, vector<8x64xf32>,
    %c0_i32_29 = arith.constant 0 : i32
    %43 = arith.cmpi eq, %arg1, %c0_i32_29 : i32
    %44 = arith.extui %43 : i1 to i32
    %c0_i32_30 = arith.constant 0 : i32
    %45 = arith.cmpi ne, %44, %c0_i32_30 : i32
    scf.if %45 {
      %c0_31 = arith.constant 0 : index
      %c0_32 = arith.constant 0 : index
      %46 = vector.load %arg6[%c0_31, %c0_32] : memref<1x64xf32, #tpu.memory_space<vmem>>, vector<1x64xf32>
      %c0_33 = arith.constant 0 : index
      %c0_34 = arith.constant 0 : index
      %47 = vector.load %arg7[%c0_33, %c0_34] : memref<1x64xf32, #tpu.memory_space<vmem>>, vector<1x64xf32>
      %c0_35 = arith.constant 0 : index
      %c0_36 = arith.constant 0 : index
      %48 = vector.load %arg8[%c0_35, %c0_36] : memref<1x64xf32, #tpu.memory_space<vmem>>, vector<1x64xf32>
      %49 = math.exp %47 : vector<1x64xf32>
      %cst_37 = arith.constant 1.000000e+00 : f32
      %50 = vector.broadcast %cst_37 : f32 to vector<1x64xf32>
      %51 = arith.addf %50, %49 : vector<1x64xf32>
      %52 = math.log %51 : vector<1x64xf32>
      %53 = arith.mulf %52, %48 : vector<1x64xf32>
      %54 = arith.addf %46, %53 : vector<1x64xf32>
      %c0_38 = arith.constant 0 : index
      %c0_39 = arith.constant 0 : index
      %55 = vector.load %arg13[%c0_38, %c0_39] : memref<1x1xf32, #tpu.memory_space<vmem>>, vector<1x1xf32>
      %56 = arith.mulf %54, %54 : vector<1x64xf32>
      %cst_40 = arith.constant dense<0.000000e+00> : vector<1xf32>
      %57 = vector.multi_reduction <add>, %56, %cst_40 [1] : vector<1x64xf32> to vector<1xf32>
      %58 = vector.shape_cast %57 : vector<1xf32> to vector<1x1xf32>
      %cst_41 = arith.constant dense<0.000000e+00> : vector<1xf32>
      %59 = vector.multi_reduction <add>, %58, %cst_41 [0] : vector<1x1xf32> to vector<1xf32>
      %60 = vector.shape_cast %59 : vector<1xf32> to vector<1x1xf32>
      %cst_42 = arith.constant -5.000000e-01 : f32
      %61 = vector.broadcast %cst_42 : f32 to vector<1x1xf32>
      %62 = arith.mulf %61, %60 : vector<1x1xf32>
      %63 = arith.addf %55, %62 : vector<1x1xf32>
      %c0_43 = arith.constant 0 : index
      %c0_44 = arith.constant 0 : index
      %64 = vector.load %arg14[%c0_43, %c0_44] : memref<1x1xf32, #tpu.memory_space<vmem>>, vector<1x1xf32>
      %65 = arith.mulf %48, %48 : vector<1x64xf32>
      %cst_45 = arith.constant dense<0.000000e+00> : vector<1xf32>
      %66 = vector.multi_reduction <add>, %65, %cst_45 [1] : vector<1x64xf32> to vector<1xf32>
      %67 = vector.shape_cast %66 : vector<1xf32> to vector<1x1xf32>
      %cst_46 = arith.constant dense<0.000000e+00> : vector<1xf32>
      %68 = vector.multi_reduction <add>, %67, %cst_46 [0] : vector<1x1xf32> to vector<1xf32>
      %69 = vector.shape_cast %68 : vector<1xf32> to vector<1x1xf32>
      %cst_47 = arith.constant -5.000000e-01 : f32
      %70 = vector.broadcast %cst_47 : f32 to vector<1x1xf32>
      %71 = arith.mulf %70, %69 : vector<1x1xf32>
      %72 = arith.addf %64, %71 : vector<1x1xf32>
      %73 = math.log %52 : vector<1x64xf32>
      %cst_48 = arith.constant dense<0.000000e+00> : vector<1xf32>
      %74 = vector.multi_reduction <add>, %73, %cst_48 [1] : vector<1x64xf32> to vector<1xf32>
      %75 = vector.shape_cast %74 : vector<1xf32> to vector<1x1xf32>
      %cst_49 = arith.constant dense<0.000000e+00> : vector<1xf32>
      %76 = vector.multi_reduction <add>, %75, %cst_49 [0] : vector<1x1xf32> to vector<1xf32>
      %77 = vector.shape_cast %76 : vector<1xf32> to vector<1x1xf32>
      %78 = arith.subf %72, %77 : vector<1x1xf32>
      %c0_50 = arith.constant 0 : index
      %c0_51 = arith.constant 0 : index
      %79 = vector.load %arg12[%c0_50, %c0_51] : memref<8x64xf32, #tpu.memory_space<vmem>>, vector<8x64xf32>
      %80 = vector.broadcast %54 : vector<1x64xf32> to vector<8x64xf32>
      %81 = arith.addf %79, %80 : vector<8x64xf32>
      %c0_52 = arith.constant 0 : index
      %c0_53 = arith.constant 0 : index
      %82 = vector.load %arg9[%c0_52, %c0_53] : memref<8x64xf32, #tpu.memory_space<vmem>>, vector<8x64xf32>
      tpu.vector_store %arg9[%c0_52, %c0_53], %81 {strides = array<i32>} : memref<8x64xf32, #tpu.memory_space<vmem>>, vector<8x64xf32>,
      %83 = tpu.iota {dimensions = array<i32: 1>} : vector<1x128xi32>
      %c0_i32_54 = arith.constant 0 : i32
      %84 = vector.broadcast %c0_i32_54 : i32 to vector<1x128xi32>
      %85 = arith.cmpi eq, %83, %84 : vector<1x128xi32>
      %cst_55 = arith.constant 0.000000e+00 : f32
      %86 = vector.shape_cast %63 : vector<1x1xf32> to vector<1x1xf32>
      %87 = vector.broadcast %86 : vector<1x1xf32> to vector<1x128xf32>
      %88 = vector.broadcast %cst_55 : f32 to vector<1x128xf32>
      %89 = arith.select %85, %87, %88 : vector<1x128xi1>, vector<1x128xf32>
      %c0_56 = arith.constant 0 : index
      %c0_57 = arith.constant 0 : index
      %90 = vector.load %arg10[%c0_56, %c0_57] : memref<1x128xf32, #tpu.memory_space<vmem>>, vector<1x128xf32>
      tpu.vector_store %arg10[%c0_56, %c0_57], %89 {strides = array<i32>} : memref<1x128xf32, #tpu.memory_space<vmem>>, vector<1x128xf32>,
      %c0_i32_58 = arith.constant 0 : i32
      %91 = vector.broadcast %c0_i32_58 : i32 to vector<1x128xi32>
      %92 = arith.cmpi eq, %83, %91 : vector<1x128xi32>
      %cst_59 = arith.constant 0.000000e+00 : f32
      %93 = vector.shape_cast %78 : vector<1x1xf32> to vector<1x1xf32>
      %94 = vector.broadcast %93 : vector<1x1xf32> to vector<1x128xf32>
      %95 = vector.broadcast %cst_59 : f32 to vector<1x128xf32>
      %96 = arith.select %92, %94, %95 : vector<1x128xi1>, vector<1x128xf32>
      %c0_60 = arith.constant 0 : index
      %c0_61 = arith.constant 0 : index
      %97 = vector.load %arg11[%c0_60, %c0_61] : memref<1x128xf32, #tpu.memory_space<vmem>>, vector<1x128xf32>
      tpu.vector_store %arg11[%c0_60, %c0_61], %96 {strides = array<i32>} : memref<1x128xf32, #tpu.memory_space<vmem>>, vector<1x128xf32>,
    } else {
    }
    return
  }
  func.func @transform_0(%arg0: i32, %arg1: i32) -> (i32, i32) {
    %c0_i32 = arith.constant 0 : i32
    %c0_i32_0 = arith.constant 0 : i32
    return %c0_i32, %arg1 : i32, i32
  }
  func.func @transform_1(%arg0: i32, %arg1: i32) -> (i32, i32) {
    %c0_i32 = arith.constant 0 : i32
    return %arg1, %arg0 : i32, i32
  }
  func.func @transform_2(%arg0: i32, %arg1: i32) -> (i32, i32) {
    %c0_i32 = arith.constant 0 : i32
    return %arg1, %arg0 : i32, i32
  }
  func.func @transform_3(%arg0: i32, %arg1: i32) -> (i32, i32) {
    %c0_i32 = arith.constant 0 : i32
    return %arg1, %arg0 : i32, i32
  }
  func.func @transform_4(%arg0: i32, %arg1: i32) -> (i32, i32) {
    %c0_i32 = arith.constant 0 : i32
    %c0_i32_0 = arith.constant 0 : i32
    return %c0_i32, %arg0 : i32, i32
  }
  func.func @transform_5(%arg0: i32, %arg1: i32) -> (i32, i32) {
    %c0_i32 = arith.constant 0 : i32
    %c0_i32_0 = arith.constant 0 : i32
    return %c0_i32, %arg0 : i32, i32
  }
  func.func @transform_6(%arg0: i32, %arg1: i32) -> (i32, i32) {
    %c0_i32 = arith.constant 0 : i32
    %c0_i32_0 = arith.constant 0 : i32
    return %c0_i32, %arg0 : i32, i32
  }
  func.func @transform_7(%arg0: i32, %arg1: i32) -> (i32, i32) {
    %c0_i32 = arith.constant 0 : i32
    %c0_i32_0 = arith.constant 0 : i32
    return %c0_i32, %arg0 : i32, i32
  }
  func.func @transform_8(%arg0: i32, %arg1: i32) -> (i32, i32) {
    %c0_i32 = arith.constant 0 : i32
    %c0_i32_0 = arith.constant 0 : i32
    return %c0_i32, %arg0 : i32, i32
  }
  func.func @transform_9(%arg0: i32, %arg1: i32) -> (i32, i32) {
    %c0_i32 = arith.constant 0 : i32
    %c0_i32_0 = arith.constant 0 : i32
    return %c0_i32, %arg0 : i32, i32
  }
}

</mosaic_0001>

<bundles_post_ra>
// kernel: tpu_custom_call.1
= control target key start
LH: loop header
LB: loop body
LE: loop exit
PB: predicated region body
PF: predicated region fallthrough
CT: control target
= control target key end

     0   :  { %15 = vsyncpa [#allocation6], 0  ;;  %s841_s0 = inlined_call_operand.hbm [shape: f32[8,32], index: 0, kind: input, shape index: {}]   ;;  %s842_s1 = inlined_call_operand.hbm [shape: f32[32,64], index: 1, kind: input, shape index: {}]   ;;  %s843_s2 = inlined_call_operand.hbm [shape: f32[32,64], index: 2, kind: input, shape index: {}]   ;;  %s844_s3 = inlined_call_operand.hbm [shape: f32[32,64], index: 3, kind: input, shape index: {}]   ;;  %s845_s4 = inlined_call_operand.vmem [shape: f32[1,64], index: 4, kind: input, shape index: {}]   ;;  %s846_s5 = inlined_call_operand.vmem [shape: f32[1,64], index: 5, kind: input, shape index: {}]   ;;  %s847_s6 = inlined_call_operand.vmem [shape: f32[1,64], index: 6, kind: input, shape index: {}]   ;;  %s848_s7 = inlined_call_operand.hbm [shape: f32[8,64], index: 7, kind: output, shape index: {0}]   ;;  %s849_s8 = inlined_call_operand.hbm [shape: f32[1,128], index: 8, kind: output, shape index: {1}]   ;;  %s850_s9 = inlined_call_operand.hbm [shape: f32[1,128], index: 9, kind: output, shape index: {2}]  }
   0x1   :  { %16 = vsyncpa [#allocation9], 0 }
   0x2   :  { %17 = vsyncpa [#allocation12], 0 }
   0x3   :  { %18 = vsyncpa [#allocation7], 0 }
   0x4   :  { %19 = vsyncpa [#allocation15], 0  ;;  %s648_s30 = smov [#allocation8]   ;;  %s484_s13 = scalar_lea.hbm %s842_s1, 512 }
   0x5   :  { %s35_s10 = sshll.u32 %s648_s30, 4  ;;  %p485_p0 = scmp.ne.s32.totalorder %s842_s1, %s484_s13  ;;  %s36_s10 = int_to_ptr.vmem [resolvable:$true] %s35_s10 }
   0x6   :  { %p488_p1 = scmp.lt.u32.totalorder %s484_s13, %s842_s1 }
   0x8   :  { %p490_p2 = pnand %p488_p1, %p485_p0 }
   0xa   :  { %493 = shalt.err (!%p490_p2)
}
   0xb   :  { %s494_s18 = scalar_lea.vmem %s36_s10, 512  ;;  %p499_p4 = scmp.lt.s32.totalorder %s36_s10, %s36_s10 }
   0xc   :  { %p495_p3 = scmp.ne.s32.totalorder %s36_s10, %s494_s18  ;;  %p500_p5 = scmp.lt.s32.totalorder %s494_s18, %s494_s18 }
   0xe   :  { %p501_p6 = por %p500_p5, %p499_p4 }
  0x10   :  { %p502_p7 = pnand %p501_p6, %p495_p3 }
  0x12   :  { %505 = shalt.err (!%p502_p7)
}
  0x13   :  { %s649_s19 = smov 128   ;;  %s650_s20 = smov 8  }
  0x14   :  { %41 = dma.hbm_to_vmem [thread:$0]  %s842_s1, 512, %s36_s10, [#allocation9], %s649_s19, %s649_s19, %s650_s20  }
  0x15   :  { %s651_s23 = smov [#allocation5]   ;;  %s652_s25 = smov [#allocation10]  }
  0x16   :  { %s26_s24 = sshll.u32 %s651_s23, 4  ;;  %s47_s26 = sshll.u32 %s652_s25, 4  ;;  %s27_s24 = int_to_ptr.vmem [resolvable:$true] %s26_s24  ;;  %s48_s26 = int_to_ptr.vmem [resolvable:$true] %s47_s26 }
  0x17   :  { %s506_s29 = scalar_lea.hbm %s841_s0, 128 }
  0x18   :  { %p507_p8 = scmp.ne.s32.totalorder %s841_s0, %s506_s29  ;;  %p510_p9 = scmp.lt.u32.totalorder %s506_s29, %s841_s0 }
  0x1a   :  { %p512_p10 = pnand %p510_p9, %p507_p8 }
  0x1c   :  { %515 = shalt.err (!%p512_p10)
}
  0x1d   :  { %s516_s1 = scalar_lea.vmem %s27_s24, 128  ;;  %p521_p12 = scmp.lt.s32.totalorder %s27_s24, %s27_s24 }
  0x1e   :  { %p517_p11 = scmp.ne.s32.totalorder %s27_s24, %s516_s1  ;;  %p522_p13 = scmp.lt.s32.totalorder %s516_s1, %s516_s1 }
  0x20   :  { %p523_p0 = por %p522_p13, %p521_p12 }
  0x22   :  { %p524_p1 = pnand %p523_p0, %p517_p11 }
  0x24   :  { %527 = shalt.err (!%p524_p1)
}
  0x25   :  { %29 = dma.hbm_to_vmem [thread:$0]  %s841_s0, 128, %s27_s24, [#allocation6]  }
  0x26   :  { %s528_s17 = scalar_lea.hbm %s843_s2, 512 }
  0x27   :  { %p529_p2 = scmp.ne.s32.totalorder %s843_s2, %s528_s17  ;;  %p532_p3 = scmp.lt.u32.totalorder %s528_s17, %s843_s2 }
  0x29   :  { %p534_p4 = pnand %p532_p3, %p529_p2 }
  0x2b   :  { %537 = shalt.err (!%p534_p4)
}
  0x2c   :  { %s538_s25 = scalar_lea.vmem %s48_s26, 512  ;;  %p543_p6 = scmp.lt.s32.totalorder %s48_s26, %s48_s26 }
  0x2d   :  { %p539_p5 = scmp.ne.s32.totalorder %s48_s26, %s538_s25  ;;  %p544_p7 = scmp.lt.s32.totalorder %s538_s25, %s538_s25 }
  0x2f   :  { %p545_p8 = por %p544_p7, %p543_p6 }
  0x31   :  { %p546_p9 = pnand %p545_p8, %p539_p5 }
  0x33   :  { %549 = shalt.err (!%p546_p9)
}
  0x34   :  { %53 = dma.hbm_to_vmem [thread:$0]  %s843_s2, 512, %s48_s26, [#allocation9], %s649_s19, %s649_s19, %s650_s20  }
  0x35   :  { %s653_s27 = smov [#allocation11]   ;;  %s550_s11 = scalar_lea.hbm %s844_s3, 512 }
  0x36   :  { %s59_s28 = sshll.u32 %s653_s27, 4  ;;  %p551_p10 = scmp.ne.s32.totalorder %s844_s3, %s550_s11  ;;  %s60_s28 = int_to_ptr.vmem [resolvable:$true] %s59_s28 }
  0x37   :  { %p554_p11 = scmp.lt.u32.totalorder %s550_s11, %s844_s3 }
  0x39   :  { %p556_p12 = pnand %p554_p11, %p551_p10 }
  0x3b   :  { %559 = shalt.err (!%p556_p12)
}
  0x3c   :  { %s560_s14 = scalar_lea.vmem %s60_s28, 512  ;;  %p565_p0 = scmp.lt.s32.totalorder %s60_s28, %s60_s28 }
  0x3d   :  { %p561_p13 = scmp.ne.s32.totalorder %s60_s28, %s560_s14  ;;  %p566_p1 = scmp.lt.s32.totalorder %s560_s14, %s560_s14 }
  0x3f   :  { %p567_p2 = por %p566_p1, %p565_p0 }
  0x41   :  { %p568_p3 = pnand %p567_p2, %p561_p13 }
  0x43   :  { %571 = shalt.err (!%p568_p3)
}
  0x44   :  { %65 = dma.hbm_to_vmem [thread:$0]  %s844_s3, 512, %s60_s28, [#allocation12], %s649_s19, %s649_s19, %s650_s20  }
  0x45   :  { %638 = dma.done.wait [#allocation6], 128  }
  0x46   :  { %639 = vsyncadd [#allocation6], 4294967168 }
  0x47   :  { %640 = dma.done.wait [#allocation9], 1024  }
  0x48   :  { %641 = vsyncadd [#allocation9], 4294966272 }
  0x49   :  { %642 = dma.done.wait [#allocation12], 512  }
  0x4a   :  { %643 = vsyncadd [#allocation12], 4294966784  ;;  %vm88_vm0 = vcmask 523264   ;;  %v654_v0 = vmov 0.0|0.0   ;;  %v655_v1 = vmov 0.0   ;;  %vm90_vm1 = vcmask 0  }
  0x4b   :  { %433 = vmatprep.subr.bf16.mxu0 %v654_v0  ;;  %89 = vst.msk [vmem:[#allocation2] sm:$0xff] %vm88_vm0, %v655_v1  ;;  %vm656_vm2 = vmmov 0   ;;  %v101_v2 = vld [vmem:[#allocation11] sm:$0xff]  ;;  %v103_v4 = vld [vmem:[#allocation11 + $0x10] sm:$0xff]  ;;  %v102_v9 = vld [vmem:[#allocation11 + $0x8] sm:$0xff]  ;;  %vm225_vm3 = vcmask 261120  }
  0x4c   :  { %91 = vst.msk [vmem:[#allocation3] sm:$0x1] %vm90_vm1, %v655_v1  ;;  %92 = vst.msk [vmem:[#allocation4] sm:$0x1] %vm90_vm1, %v655_v1  ;;  %430 = vmatprep.mubr.msk.f32.mxu0 %vm656_vm2, %v655_v1  ;;  %v97_v3 = vld [vmem:[#allocation10] sm:$0xff]  ;;  %v165_v5 = vmul.f32 %v101_v2, %v101_v2  ;;  %v167_v7 = vmul.f32 %v103_v4, %v103_v4  ;;  %v99_v8 = vld [vmem:[#allocation10 + $0x10] sm:$0xff]  ;;  %v166_v12 = vmul.f32 %v102_v9, %v102_v9 }
  0x4d   :  { %v105_v6 = vmul.f32 1.442695, %v97_v3  ;;  %v98_v10 = vld [vmem:[#allocation10 + $0x8] sm:$0xff]  ;;  %v109_v11 = vmul.f32 1.442695, %v99_v8  ;;  %v104_v14 = vld [vmem:[#allocation11 + $0x18] sm:$0xff] }
  0x4e   :  { %v107_v13 = vmul.f32 1.442695, %v98_v10  ;;  %v100_v15 = vld [vmem:[#allocation10 + $0x18] sm:$0xff]  ;;  %v169_v16 = vsel %vm88_vm0, %v165_v5, 0.0  ;;  %v175_v17 = vsel %vm88_vm0, %v167_v7, 0.0  ;;  %v168_v18 = vmul.f32 %v104_v14, %v104_v14  ;;  %v93_v39 = vld [vmem:[#allocation8] sm:$0xff] }
  0x4f   :  { %454 = vpow2.f32 %v105_v6  ;;  %170 = vadd.xlane.f32.xlu0 %v169_v16  ;;  %176 = vadd.xlane.f32.xlu1 %v175_v17  ;;  %v111_v19 = vmul.f32 1.442695, %v100_v15  ;;  %v305_v20 = vld [vmem:[%s846_s5] sm:$0x1]  ;;  %v172_v21 = vsel %vm88_vm0, %v166_v12, 0.0  ;;  %v95_v48 = vld [vmem:[#allocation8 + $0x10] sm:$0xff] }
  0x50   :  { %456 = vpow2.f32 %v109_v11  ;;  %v178_v22 = vsel %vm88_vm0, %v168_v18, 0.0  ;;  %v307_v23 = vmul.f32 1.442695, %v305_v20  ;;  %v94_v45 = vld [vmem:[#allocation8 + $0x8] sm:$0xff]  ;;  %v96_v50 = vld [vmem:[#allocation8 + $0x18] sm:$0xff]  ;;  %vm316_vm4 = vcmask 516096  }
  0x51   :  { %458 = vpow2.f32 %v107_v13  ;;  %v306_v60 = vld [vmem:[%s847_s6] sm:$0x1]  ;;  %v224_v7 = vld [vmem:[#allocation5] sm:$0xff] }
  0x52   :  { %460 = vpow2.f32 %v111_v19  ;;  %v304_v6 = vld [vmem:[%s845_s4] sm:$0x1]  ;;  %v324_v20 = vmul.f32 %v306_v60, %v306_v60  ;;  %s658_s4 = smov [#allocation13]  }
  0x53   :  { %462 = vpow2.f32 %v307_v23  ;;  %173 = vadd.xlane.f32.xlu0 %v172_v21  ;;  %179 = vadd.xlane.f32.xlu1 %v178_v22  ;;  %s378_s6 = sshll.u32 %s658_s4, 4  ;;  %s379_s6 = int_to_ptr.vmem [resolvable:$true] %s378_s6 }
  0x54   :  { %v325_v23 = vsel %vm316_vm4, %v324_v20, 0.0  ;;  %v340_v20 = vlaneseq  ;;  %s572_s17 = scalar_lea.vmem %s379_s6, 128  ;;  %p577_p5 = scmp.lt.s32.totalorder %s379_s6, %s379_s6 }
  0x55   :  { %p573_p4 = scmp.ne.s32.totalorder %s379_s6, %s572_s17  ;;  %p578_p6 = scmp.lt.s32.totalorder %s572_s17, %s572_s17 }
  0x57   :  { %p579_p7 = por %p578_p6, %p577_p5 }
  0x59   :  { %v455_v24 = vpop.eup %454  ;;  %p580_p8 = pnand %p579_p7, %p573_p4 }
  0x5a   :  { %v457_v25 = vpop.eup %456  ;;  %v113_v26 = vadd.f32 1.0, %v455_v24 }
  0x5b   :  { %v459_v27 = vpop.eup %458  ;;  %v115_v28 = vadd.f32 1.0, %v457_v25 }
  0x5c   :  { %v461_v29 = vpop.eup %460  ;;  %464 = vlog2.f32 %v113_v26  ;;  %v114_v30 = vadd.f32 1.0, %v459_v27  ;;  %v657_v26 = vmov 0  }
  0x5d   :  { %v463_v31 = vpop.eup %462  ;;  %466 = vlog2.f32 %v115_v28  ;;  %v116_v32 = vadd.f32 1.0, %v461_v29  ;;  %452 = vset.pattern.permute.xlu1 %v657_v26  ;;  %453 = vset.pattern.permute.xlu0 %v657_v26 }
  0x5e   :  { %468 = vlog2.f32 %v114_v30  ;;  %v309_v33 = vadd.f32 1.0, %v463_v31 }
  0x5f   :  { %470 = vlog2.f32 %v116_v32 }
  0x60   :  { %472 = vlog2.f32 %v309_v33 }
  0x66   :  { %v465_v34 = vpop.eup %464 }
  0x67   :  { %v467_v35 = vpop.eup %466  ;;  %v118_v36 = vmul.f32 0.6931472, %v465_v34 }
  0x68   :  { %v469_v37 = vpop.eup %468  ;;  %v122_v38 = vmul.f32 0.6931472, %v467_v35 }
  0x69   :  { %v471_v40 = vpop.eup %470  ;;  %v125_v41 = vmul.f32 %v118_v36, %v101_v2  ;;  %v120_v42 = vmul.f32 0.6931472, %v469_v37  ;;  %474 = vlog2.f32 %v118_v36 }
  0x6a   :  { %v127_v43 = vmul.f32 %v122_v38, %v103_v4  ;;  %v124_v44 = vmul.f32 0.6931472, %v471_v40  ;;  %476 = vlog2.f32 %v122_v38  ;;  %v473_v53 = vpop.eup %472 }
  0x6b   :  { %v126_v46 = vmul.f32 %v120_v42, %v102_v9  ;;  %v129_v47 = vadd.f32 %v125_v41, %v93_v39  ;;  %478 = vlog2.f32 %v120_v42  ;;  %v311_v61 = vmul.f32 0.6931472, %v473_v53 }
  0x6c   :  { %v128_v49 = vmul.f32 %v124_v44, %v104_v14  ;;  %480 = vlog2.f32 %v124_v44  ;;  %v131_v54 = vadd.f32 %v127_v43, %v95_v48 }
  0x6d   :  { %v130_v51 = vadd.f32 %v126_v46, %v94_v45  ;;  %v134_v52 = vmul.f32 %v129_v47, %v129_v47  ;;  %v312_v4 = vmul.f32 %v311_v61, %v306_v60  ;;  %482 = vlog2.f32 %v311_v61 }
  0x6e   :  { %v132_v57 = vadd.f32 %v128_v49, %v96_v50  ;;  %v136_v3 = vmul.f32 %v131_v54, %v131_v54 }
  0x6f   :  { %v135_v55 = vmul.f32 %v130_v51, %v130_v51  ;;  %v139_v56 = vsel %vm88_vm0, %v134_v52, 0.0  ;;  %v434_v58 = vpack.c.bf16 %v130_v51, %v129_v47  ;;  %v791_v14 = vadd.f32 %v312_v4, %v304_v6  ;;  %v164_v6 = vld [vmem:[#allocation4] sm:$0x1] }
  0x70   :  { %140 = vadd.xlane.f32.xlu1 %v139_v56  ;;  %v437_v62 = vpack.c.bf16 %v132_v57, %v131_v54  ;;  %v145_v12 = vsel %vm88_vm0, %v136_v3, 0.0  ;;  %v137_v13 = vmul.f32 %v132_v57, %v132_v57 }
  0x71   :  { %v142_v59 = vsel %vm88_vm0, %v135_v55, 0.0  ;;  %435 = vmatpush3.bf16.msra.mxu0 %v434_v58  ;;  %v315_v18 = vmul.f32 %v791_v14, %v791_v14 }
  0x72   :  { %143 = vadd.xlane.f32.xlu0 %v142_v59  ;;  %436 = vmatprep.subr.bf16.mxu0 %v654_v0  ;;  %v148_v17 = vsel %vm88_vm0, %v137_v13, 0.0 }
  0x73   :  { %v475_v63 = vpop.eup %474  ;;  %v317_v22 = vsel %vm316_vm4, %v315_v18, 0.0 }
  0x74   :  { %v477_v1 = vpop.eup %476  ;;  %v192_v2 = vmul.f32 0.6931472, %v475_v63 }
  0x75   :  { %v479_v5 = vpop.eup %478  ;;  %438 = vmatpush3.bf16.msra.mxu0 %v437_v62  ;;  %v196_v10 = vmul.f32 0.6931472, %v477_v1 }
  0x76   :  { %v194_v8 = vmul.f32 0.6931472, %v479_v5  ;;  %v199_v9 = vsel %vm88_vm0, %v192_v2, 0.0  ;;  %v481_v11 = vpop.eup %480  ;;  %v133_v2 = vld [vmem:[#allocation3] sm:$0x1] }
  0x77   :  { %200 = vadd.xlane.f32.xlu1 %v199_v9  ;;  %v205_v15 = vsel %vm88_vm0, %v196_v10, 0.0  ;;  %v198_v16 = vmul.f32 0.6931472, %v481_v11  ;;  %v483_v21 = vpop.eup %482 }
  0x78   :  { %v202_v0 = vsel %vm88_vm0, %v194_v8, 0.0  ;;  %431 = vmatmul.mubr.msk.f32.vlgmr.msra.gmra.mrb[0].mxu0 %vm225_vm3, %v224_v7  ;;  %v332_v24 = vmul.f32 0.6931472, %v483_v21  ;;  %v223_v21 = vld [vmem:[#allocation2] sm:$0xff] }
  0x79   :  { %203 = vadd.xlane.f32.xlu0 %v202_v0  ;;  %v208_v19 = vsel %vm88_vm0, %v198_v16, 0.0 }
  0x7a   :  { %v333_v25 = vsel %vm316_vm4, %v332_v24, 0.0 }
  0x7b   :  { %146 = vadd.xlane.f32.xlu1 %v145_v12 }
  0x7d   :  { %206 = vadd.xlane.f32.xlu0 %v205_v15 }
  0x7f   :  { %149 = vadd.xlane.f32.xlu1 %v148_v17 }
  0x81   :  { %209 = vadd.xlane.f32.xlu0 %v208_v19 }
  0x83   :  { %318 = vadd.xlane.f32.xlu1 %v317_v22  ;;  %v341_v22 = vshrl.u32 %v340_v20, 7 }
  0x85   :  { %326 = vadd.xlane.f32.xlu0 %v325_v23  ;;  %v342_v26 = vsub.s32 0, %v341_v22 }
  0x89   :  { %334 = vadd.xlane.f32.xlu0 %v333_v25 }
  0xdc   :  { %v171_v27 = vpop.xlane.xlu0 %170  ;;  %v177_v28 = vpop.xlane.xlu1 %176 }
  0xe0   :  { %v174_v29 = vpop.xlane.xlu0 %173  ;;  %v180_v31 = vpop.xlane.xlu1 %179 }
  0xe1   :  { %v181_v30 = vadd.f32 %v174_v29, %v171_v27  ;;  %v343_v27 = vrot.slane %v791_v14, %v342_v26 }
  0xe3   :  { %v182_v32 = vadd.f32 %v181_v30, %v177_v28 }
  0xe5   :  { %v183_v34 = vadd.f32 %v182_v32, %v180_v31 }
  0xe7   :  { %v184_v36 = vrot.slane %v183_v34, 4 }
  0xe9   :  { %v185_v39 = vadd.f32 %v184_v36, %v183_v34 }
  0xeb   :  { %v186_v43 = vrot.slane %v185_v39, 2 }
  0xed   :  { %v187_v50 = vadd.f32 %v186_v43, %v185_v39 }
  0xef   :  { %v188_v55 = vrot.slane %v187_v50, 1 }
  0xf1   :  { %v189_v60 = vadd.f32 %v188_v55, %v187_v50 }
  0xf3   :  { %v190_v3 = vmul.f32 -0.5, %v189_v60 }
  0xfd   :  { %v141_v33 = vpop.xlane.xlu1 %140 }
  0xff   :  { %v144_v35 = vpop.xlane.xlu0 %143 }
 0x100   :  { %v151_v41 = vadd.f32 %v144_v35, %v141_v33 }
 0x104   :  { %v201_v37 = vpop.xlane.xlu1 %200 }
 0x106   :  { %v204_v38 = vpop.xlane.xlu0 %203 }
 0x107   :  { %v211_v44 = vadd.f32 %v204_v38, %v201_v37 }
 0x108   :  { %v147_v40 = vpop.xlane.xlu1 %146 }
 0x109   :  { %v152_v45 = vadd.f32 %v151_v41, %v147_v40 }
 0x10a   :  { %v207_v42 = vpop.xlane.xlu0 %206 }
 0x10b   :  { %v212_v47 = vadd.f32 %v211_v44, %v207_v42 }
 0x10c   :  { %v150_v46 = vpop.xlane.xlu1 %149 }
 0x10d   :  { %v153_v48 = vadd.f32 %v152_v45, %v150_v46 }
 0x10e   :  { %v210_v49 = vpop.xlane.xlu0 %209 }
 0x10f   :  { %v213_v51 = vadd.f32 %v212_v47, %v210_v49  ;;  %v154_v52 = vrot.slane %v153_v48, 4 }
 0x110   :  { %v319_v10 = vpop.xlane.xlu1 %318 }
 0x111   :  { %v214_v53 = vrot.slane %v213_v51, 4  ;;  %v155_v54 = vadd.f32 %v154_v52, %v153_v48  ;;  %v321_v0 = vmul.f32 -0.5, %v319_v10 }
 0x112   :  { %v327_v11 = vpop.xlane.xlu0 %326 }
 0x113   :  { %v215_v56 = vadd.f32 %v214_v53, %v213_v51  ;;  %v156_v57 = vrot.slane %v155_v54, 2  ;;  %v329_v12 = vmul.f32 -0.5, %v327_v11 }
 0x115   :  { %v216_v58 = vrot.slane %v215_v56, 2  ;;  %v157_v59 = vadd.f32 %v156_v57, %v155_v54 }
 0x116   :  { %v335_v16 = vpop.xlane.xlu0 %334 }
 0x117   :  { %v217_v61 = vadd.f32 %v216_v58, %v215_v56  ;;  %v158_v62 = vrot.slane %v157_v59, 1 }
 0x119   :  { %v218_v63 = vrot.slane %v217_v61, 1  ;;  %v159_v1 = vadd.f32 %v158_v62, %v157_v59 }
 0x11b   :  { %v219_v4 = vadd.f32 %v218_v63, %v217_v61  ;;  %v160_v5 = vmul.f32 -0.5, %v159_v1 }
 0x11d   :  { %v220_v7 = vsub.f32 %v190_v3, %v219_v4  ;;  %v161_v8 = vadd.f32 %v160_v5, %v133_v2 }
 0x11f   :  { %v221_v9 = vadd.f32 %v220_v7, %v164_v6  ;;  %163 = vst.msk [vmem:[#allocation3] sm:$0x1] %vm90_vm1, %v161_v8 }
 0x121   :  { %222 = vst.msk [vmem:[#allocation4] sm:$0x1] %vm90_vm1, %v221_v9 }
 0x126   :  { %v314_v13 = vld [vmem:[#allocation3] sm:$0x1] }
 0x127   :  { %v322_v15 = vadd.f32 %v321_v0, %v314_v13 }
 0x128   :  { %v323_v17 = vld [vmem:[#allocation4] sm:$0x1] }
 0x129   :  { %v330_v18 = vadd.f32 %v329_v12, %v323_v17  ;;  %352 = vperm.xlu1 %452, %v322_v15  }
 0x12b   :  { %v337_v19 = vsub.f32 %v330_v18, %v335_v16 }
 0x12d   :  { %363 = vperm.xlu0 %453, %v337_v19  }
 0x14b   :  { %v295_v23 = vpop.f32.mrb[0].mxu0 }
 0x14c   :  { %v299_v24 = vadd.f32 %v295_v23, %v223_v21  ;;  %v432_v25 = vpop.f32.mrb[1].mxu0 }
 0x14e   :  { %300 = vst.msk [vmem:[#allocation2] sm:$0xff] %vm88_vm0, %v299_v24 }
 0x155   :  { %v338_v28 = vld [vmem:[#allocation2] sm:$0xff] }
 0x156   :  { %v345_v29 = vadd.f32 %v343_v27, %v338_v28 }
 0x158   :  { %346 = vst.msk [vmem:[#allocation13] sm:$0xff] %vm88_vm0, %v345_v29 }
 0x159   :  { %583 = shalt.err (!%p580_p8)
}
 0x15a   :  { %s584_s22 = scalar_lea.hbm %s848_s7, 128 }
 0x15b   :  { %p585_p9 = scmp.ne.s32.totalorder %s848_s7, %s584_s22  ;;  %p588_p10 = scmp.lt.u32.totalorder %s584_s22, %s848_s7 }
 0x15d   :  { %p590_p11 = pnand %p588_p10, %p585_p9 }
 0x15f   :  { %593 = shalt.err (!%p590_p11)
}
 0x160   :  { %381 = dma.vmem_to_hbm [thread:$0]  %s379_s6, 128, %s848_s7, [#allocation7]   ;;  %v348_v14 = vand.u32 127, %v340_v20 }
 0x161   :  { %s659_s29 = smov [#allocation14]   ;;  %s660_s11 = smov [#allocation16]  }
 0x162   :  { %s388_s30 = sshll.u32 %s659_s29, 4  ;;  %vm349_vm5 = vcmp.eq.s32.totalorder %v348_v14, 0  ;;  %s398_s12 = sshll.u32 %s660_s11, 4  ;;  %s389_s30 = int_to_ptr.vmem [resolvable:$true] %s388_s30  ;;  %s399_s12 = int_to_ptr.vmem [resolvable:$true] %s398_s12 }
 0x163   :  { %s594_s13 = scalar_lea.vmem %s389_s30, 16  ;;  %s598_s1 = scalar_lea.vmem %s389_s30, 32 }
 0x164   :  { %p595_p12 = scmp.ne.s32.totalorder %s389_s30, %s594_s13  ;;  %p599_p13 = scmp.lt.s32.totalorder %s389_s30, %s389_s30 }
 0x165   :  { %p600_p0 = scmp.lt.s32.totalorder %s598_s1, %s594_s13 }
 0x167   :  { %p601_p1 = por %p600_p0, %p599_p13 }
 0x169   :  { %p602_p2 = pnand %p601_p1, %p595_p12 }
 0x1a8   :  { %v353_v30 = vpop.permute.xlu1 %352 }
 0x1a9   :  { %v358_v31 = vrot.slane %v353_v30, %v342_v26 }
 0x1ab   :  { %v359_v32 = vsel %vm349_vm5, %v358_v31, 0.0 }
 0x1ac   :  { %360 = vst [vmem:[#allocation14] sm:$0x1] %v359_v32  ;;  %v364_v33 = vpop.permute.xlu0 %363 }
 0x1ad   :  { %v369_v34 = vrot.slane %v364_v33, %v342_v26 }
 0x1ae   :  { %605 = shalt.err (!%p602_p2)
}
 0x1af   :  { %s606_s14 = scalar_lea.hbm %s849_s8, 16 }
 0x1b0   :  { %p607_p3 = scmp.ne.s32.totalorder %s849_s8, %s606_s14  ;;  %p610_p4 = scmp.lt.u32.totalorder %s606_s14, %s849_s8 }
 0x1b2   :  { %p612_p5 = pnand %p610_p4, %p607_p3 }
 0x1b4   :  { %615 = shalt.err (!%p612_p5)
}
 0x1b5   :  { %391 = dma.vmem_to_hbm [thread:$0]  %s389_s30, 16, %s849_s8, [#allocation15]   ;;  %v370_v35 = vsel %vm349_vm5, %v369_v34, 0.0 }
 0x1b6   :  { %371 = vst [vmem:[#allocation16] sm:$0x1] %v370_v35  ;;  %s616_s15 = scalar_lea.vmem %s399_s12, 16  ;;  %s620_s16 = scalar_lea.vmem %s399_s12, 32 }
 0x1b7   :  { %p617_p6 = scmp.ne.s32.totalorder %s399_s12, %s616_s15  ;;  %p621_p7 = scmp.lt.s32.totalorder %s399_s12, %s399_s12 }
 0x1b8   :  { %p622_p8 = scmp.lt.s32.totalorder %s620_s16, %s616_s15 }
 0x1ba   :  { %p623_p9 = por %p622_p8, %p621_p7 }
 0x1bc   :  { %p624_p10 = pnand %p623_p9, %p617_p6 }
 0x1be   :  { %627 = shalt.err (!%p624_p10)
}
 0x1bf   :  { %s628_s17 = scalar_lea.hbm %s850_s9, 16 }
 0x1c0   :  { %p629_p11 = scmp.ne.s32.totalorder %s850_s9, %s628_s17  ;;  %p632_p12 = scmp.lt.u32.totalorder %s628_s17, %s850_s9 }
 0x1c2   :  { %p634_p13 = pnand %p632_p12, %p629_p11 }
 0x1c4   :  { %637 = shalt.err (!%p634_p13)
}
 0x1c5   :  { %401 = dma.vmem_to_hbm [thread:$0]  %s399_s12, 16, %s850_s9, [#allocation15]  }
 0x1c6   :  { %644 = dma.done.wait [#allocation7], 128  }
 0x1c7   :  { %645 = vsyncadd [#allocation7], 4294967168 }
 0x1c8   :  { %646 = dma.done.wait [#allocation15], 32  }
 0x1c9   :  { %647 = vsyncadd [#allocation15], 4294967264 }
 0x1ca   :  { %411 = vsyncpa [#allocation6], 1 }
 0x1cb   :  { %412 = vsyncpa [#allocation9], 1 }
 0x1cc   :  { %413 = vsyncpa [#allocation12], 1 }
 0x1cd   :  { %414 = vsyncpa [#allocation7], 1 }
 0x1ce   :  { %415 = vsyncpa [#allocation15], 1 }

</bundles_post_ra>
